<compile_context>
chip_gen: v6e
topology: v6e:2x2x1
jax: 0.10.0
libtpu: 0.0.40
codegen_flags: <defaults>
</compile_context>

<pallas_src>
import jax
import jax.numpy as jnp
from jax import lax
from jax.experimental import pallas as pl
from jax.experimental.pallas import tpu as pltpu


def _make_mahalanobis_kernel(b_true: int, tb: int, steps_per_core: int,
                             mxu_dtype):
    def kernel(feat_ref, mean_ref, cov_i_ref, out_ref):
        # feat_ref : (TB, D)   native dtype VMEM -- streamed, double-buffered
        # mean_ref : (1,  D)   f32 VMEM          -- resident
        # cov_i_ref: (D,  D)   mxu_dtype VMEM    -- resident
        # out_ref  : (1, 8, 128) f32 VMEM        -- per-core partial-sum block
        c = pl.program_id(0)          # core axis ("parallel")
        s = pl.program_id(1)          # per-core step axis ("arbitrary")

        @pl.when(s == 0)
        def _():
            out_ref[...] = jnp.zeros_like(out_ref)

        feat = feat_ref[...].astype(jnp.float32)
        diff = feat - mean_ref[...]                               # (TB, D) VPU
        md = jnp.dot(diff.astype(mxu_dtype), cov_i_ref[...],
                     preferred_element_type=jnp.float32)          # (TB, D) MXU
        per_row = jnp.sum(md * diff, axis=1, keepdims=True)       # (TB, 1) XLU
        dist = jnp.sqrt(jnp.maximum(per_row, 0.0))                # clamp (PSD)

        linear_step = c * steps_per_core + s
        needs_mask = (linear_step + 1) * tb > b_true              # scalar bool

        # Full tiles: plain reduction (no iota/cmp/select VPU work).
        @pl.when(jnp.logical_not(needs_mask))
        def _():
            out_ref[...] += jnp.sum(dist)

        # Ragged boundary tile (and any clamped overflow step): mask rows >= B.
        @pl.when(needs_mask)
        def _():
            row = lax.broadcasted_iota(jnp.int32, (tb, 1), 0)
            valid = (linear_step * tb + row) < b_true
            out_ref[...] += jnp.sum(jnp.where(valid, dist, 0.0))

    return kernel


def mahalanobis_loss(features: jax.Array,
                     mean: jax.Array,
                     cov_i: jax.Array,
                     *,
                     tb: int = 1024,
                     use_bf16: bool = True) -> jax.Array:
    """features: (B, D), mean: (D,), cov_i: (D, D) -> scalar f32 loss."""
    B, D = features.shape
    # Stream features in their native dtype (f32/bf16) -- no extra HBM copy.
    if features.dtype not in (jnp.bfloat16, jnp.float32):
        features = features.astype(jnp.float32)
    mean2d = mean.astype(jnp.float32).reshape(1, D)
    mxu_dtype = jnp.bfloat16 if use_bf16 else jnp.float32
    cov_i = cov_i.astype(mxu_dtype)      # cast ONCE (not per grid step)

    def _round_up(x, m):
        return ((x + m - 1) // m) * m

    # Generation-aware VMEM budget (v7x: 64 MiB, v5e/v6e: 128 MiB physical).
    try:
        info = pltpu.get_tpu_info()
        vmem_cap = int(getattr(info, "vmem_capacity_bytes", 64 << 20))
    except Exception:  # pragma: no cover - conservative fallback
        vmem_cap = 64 << 20
    vmem_budget = int(vmem_cap * 0.85)

    feat_bytes = jnp.dtype(features.dtype).itemsize
    cov_bytes = jnp.dtype(mxu_dtype).itemsize
    resident = D * D * cov_bytes + D * 4 + (2 << 20)   # cov_i + mean + slack

    # Batch tile: multiple of 8 sublanes, large by default, shrunk to fit VMEM.
    TB = min(_round_up(tb, 8), _round_up(B, 8))
    while TB > 8 and (2 * TB * D * feat_bytes + resident) > vmem_budget:
        TB = max(8, _round_up(TB // 2, 8))
    # TODO(synk): for very large D (resident cov_i approaching VMEM) add a
    #             second reduction axis tiling cov_i columns instead of
    #             shrinking TB; also consider padding D to a multiple of 128.

    n_steps = pl.cdiv(B, TB)             # logical batch tiles (no jnp.pad)
    NC = 2 if n_steps >= 2 else 1        # shard tiles across 2 TCs on v7x
    spc = pl.cdiv(n_steps, NC)           # steps per core

    need = 2 * TB * D * feat_bytes + resident + (4 << 20)
    vmem_limit = int(min(max(need, 32 << 20), vmem_budget))

    kernel = _make_mahalanobis_kernel(B, TB, spc, mxu_dtype)

    # Feature index map: clamp so the (possibly) one overflow step of the last
    # core re-reads the final in-bounds tile; its rows are fully masked anyway.
    def feat_map(c, s):
        return (jnp.minimum(c * spc + s, n_steps - 1), 0)

    partials = pl.pallas_call(
        kernel,
        out_shape=jax.ShapeDtypeStruct((NC, 8, 128), jnp.float32),
        grid_spec=pltpu.PrefetchScalarGridSpec(
            num_scalar_prefetch=0,
            grid=(NC, spc),
            in_specs=[
                pl.BlockSpec((TB, D), feat_map),          # streamed batch tile
                pl.BlockSpec((1, D), lambda c, s: (0, 0)),    # resident mean
                pl.BlockSpec((D, D), lambda c, s: (0, 0)),    # resident cov_i
            ],
            out_specs=pl.BlockSpec((1, 8, 128), lambda c, s: (c, 0, 0)),
        ),
        compiler_params=pltpu.CompilerParams(
            dimension_semantics=("parallel", "arbitrary"),
            vmem_limit_bytes=vmem_limit,
        ),
    )(features, mean2d, cov_i)

    # Reduce per-core partial sums and take the mean over the true batch.
    return jnp.sum(partials[:, 0, 0]) / float(B)


def _reference(features, mean, cov_i):
    diff = features - mean[None, :]
    return jnp.mean(jnp.sqrt(jnp.maximum(
        jnp.sum((diff @ cov_i) * diff, axis=1), 0.0)))


if __name__ == "__main__":
    key = jax.random.PRNGKey(0)
    k_feat1, k_feat2, k_mean, k_a = jax.random.split(key, 4)

    D = 128
    mean = jax.random.normal(k_mean, (D,), dtype=jnp.float32)
    # Symmetric positive-definite "inverse covariance", built deterministically.
    A = jax.random.normal(k_a, (D, D), dtype=jnp.float32) * 0.05
    cov_i = A @ A.T + jnp.eye(D, dtype=jnp.float32)

    # Case 1: small batch, single grid step, f32 MXU path -> tight tolerance.
    B1 = 8
    feats1 = jax.random.normal(k_feat1, (B1, D), dtype=jnp.float32)
    loss1 = jax.block_until_ready(
        mahalanobis_loss(feats1, mean, cov_i, use_bf16=False))
    ref1 = _reference(feats1, mean, cov_i)
    assert jnp.allclose(loss1, ref1, rtol=1e-5, atol=1e-5), (loss1, ref1)

    # Case 2: ragged batch with a tiny tile -> multi-step grid, 2-core split,
    # boundary-block masking, bf16 features streamed natively, bf16 MXU.
    B2 = 20
    feats2 = jax.random.normal(
        k_feat2, (B2, D), dtype=jnp.float32).astype(jnp.bfloat16)
    loss2 = jax.block_until_ready(
        mahalanobis_loss(feats2, mean, cov_i, tb=8, use_bf16=True))
    ref2 = _reference(feats2.astype(jnp.float32), mean, cov_i)
    assert jnp.allclose(loss2, ref2, rtol=2e-2, atol=2e-2), (loss2, ref2)

    print("KERNEL_OK")
</pallas_src>

<mosaic_0001>
module attributes {stable_mosaic.version = 11 : i64} {
  func.func @kernel(%arg0: i32, %arg1: i32, %arg2: memref<8x128xf32, #tpu.memory_space<vmem>>, %arg3: memref<1x128xf32, #tpu.memory_space<vmem>>, %arg4: memref<128x128xf32, #tpu.memory_space<vmem>>, %arg5: memref<1x8x128xf32, #tpu.memory_space<vmem>>) attributes {dimension_semantics = [#tpu.dimension_semantics<parallel>, #tpu.dimension_semantics<arbitrary>], iteration_bounds = array<i64: 1, 1>, scalar_prefetch = 0 : i64, scratch_operands = 0 : i64, tpu.core_type = #tpu.core_type<tc>, window_params = [{transform_indices = @transform_0, window_bounds = array<i64: 8, 128>}, {pipeline_mode = #tpu.pipeline_mode<synchronous>, transform_indices = @transform_1, window_bounds = array<i64: 1, 128>}, {pipeline_mode = #tpu.pipeline_mode<synchronous>, transform_indices = @transform_2, window_bounds = array<i64: 128, 128>}, {transform_indices = @transform_3, window_bounds = array<i64: 1, 8, 128>}]} {
    %c0_i32 = arith.constant 0 : i32
    %0 = arith.cmpi eq, %arg1, %c0_i32 : i32
    %1 = arith.extui %0 : i1 to i32
    %c0_i32_0 = arith.constant 0 : i32
    %2 = arith.cmpi ne, %1, %c0_i32_0 : i32
    scf.if %2 {
      %cst_12 = arith.constant 0.000000e+00 : f32
      %25 = vector.broadcast %cst_12 : f32 to vector<1x8x128xf32>
      %c0_13 = arith.constant 0 : index
      %c0_14 = arith.constant 0 : index
      %c0_15 = arith.constant 0 : index
      %26 = vector.load %arg5[%c0_13, %c0_14, %c0_15] : memref<1x8x128xf32, #tpu.memory_space<vmem>>, vector<1x8x128xf32>
      tpu.vector_store %arg5[%c0_13, %c0_14, %c0_15], %25 {strides = array<i32>} : memref<1x8x128xf32, #tpu.memory_space<vmem>>, vector<1x8x128xf32>,
    } else {
    }
    %c0 = arith.constant 0 : index
    %c0_1 = arith.constant 0 : index
    %3 = vector.load %arg2[%c0, %c0_1] : memref<8x128xf32, #tpu.memory_space<vmem>>, vector<8x128xf32>
    %c0_2 = arith.constant 0 : index
    %c0_3 = arith.constant 0 : index
    %4 = vector.load %arg3[%c0_2, %c0_3] : memref<1x128xf32, #tpu.memory_space<vmem>>, vector<1x128xf32>
    %5 = vector.broadcast %4 : vector<1x128xf32> to vector<8x128xf32>
    %6 = arith.subf %3, %5 : vector<8x128xf32>
    %c0_4 = arith.constant 0 : index
    %c0_5 = arith.constant 0 : index
    %7 = vector.load %arg4[%c0_4, %c0_5] : memref<128x128xf32, #tpu.memory_space<vmem>>, vector<128x128xf32>
    %cst = arith.constant dense<0.000000e+00> : vector<8x128xf32>
    %8 = tpu.matmul %6, %7, %cst {dimension_numbers = #tpu.dot_dimension_numbers<[1], [0], [0], [1], [0, 0, 1, 1], [], []>} : vector<8x128xf32>, vector<128x128xf32>, vector<8x128xf32> -> vector<8x128xf32>
    %9 = arith.mulf %8, %6 : vector<8x128xf32>
    %cst_6 = arith.constant dense<0.000000e+00> : vector<8xf32>
    %10 = vector.multi_reduction <add>, %9, %cst_6 [1] : vector<8x128xf32> to vector<8xf32>
    %11 = vector.shape_cast %10 : vector<8xf32> to vector<8x1xf32>
    %cst_7 = arith.constant 0.000000e+00 : f32
    %12 = vector.broadcast %cst_7 : f32 to vector<8x1xf32>
    %13 = arith.maximumf %11, %12 : vector<8x1xf32>
    %14 = math.sqrt %13 : vector<8x1xf32>
    %c1_i32 = arith.constant 1 : i32
    %15 = arith.muli %arg0, %c1_i32 : i32
    %16 = arith.addi %15, %arg1 : i32
    %c1_i32_8 = arith.constant 1 : i32
    %17 = arith.addi %16, %c1_i32_8 : i32
    %c8_i32 = arith.constant 8 : i32
    %18 = arith.muli %17, %c8_i32 : i32
    %c8_i32_9 = arith.constant 8 : i32
    %19 = arith.cmpi sgt, %18, %c8_i32_9 : i32
    %true = arith.constant true
    %20 = arith.xori %19, %true : i1
    %21 = arith.extui %20 : i1 to i32
    %c0_i32_10 = arith.constant 0 : i32
    %22 = arith.cmpi ne, %21, %c0_i32_10 : i32
    scf.if %22 {
      %c0_12 = arith.constant 0 : index
      %c0_13 = arith.constant 0 : index
      %c0_14 = arith.constant 0 : index
      %25 = vector.load %arg5[%c0_12, %c0_13, %c0_14] : memref<1x8x128xf32, #tpu.memory_space<vmem>>, vector<1x8x128xf32>
      %26 = vector.shape_cast %14 : vector<8x1xf32> to vector<1x8x1xf32>
      %cst_15 = arith.constant dense<0.000000e+00> : vector<1xf32>
      %27 = vector.multi_reduction <add>, %26, %cst_15 [1, 2] : vector<1x8x1xf32> to vector<1xf32>
      %28 = vector.shape_cast %27 : vector<1xf32> to vector<1x1x1xf32>
      %29 = vector.extract %28[0, 0, 0] : f32 from vector<1x1x1xf32>
      %30 = vector.broadcast %29 : f32 to vector<1x8x128xf32>
      %31 = arith.addf %25, %30 : vector<1x8x128xf32>
      %c0_16 = arith.constant 0 : index
      %c0_17 = arith.constant 0 : index
      %c0_18 = arith.constant 0 : index
      %32 = vector.load %arg5[%c0_16, %c0_17, %c0_18] : memref<1x8x128xf32, #tpu.memory_space<vmem>>, vector<1x8x128xf32>
      tpu.vector_store %arg5[%c0_16, %c0_17, %c0_18], %31 {strides = array<i32>} : memref<1x8x128xf32, #tpu.memory_space<vmem>>, vector<1x8x128xf32>,
    } else {
    }
    %23 = arith.extui %19 : i1 to i32
    %c0_i32_11 = arith.constant 0 : i32
    %24 = arith.cmpi ne, %23, %c0_i32_11 : i32
    scf.if %24 {
      %25 = tpu.iota {dimensions = array<i32: 0>} : vector<8x1xi32>
      %c8_i32_12 = arith.constant 8 : i32
      %26 = arith.muli %16, %c8_i32_12 : i32
      %27 = vector.broadcast %26 : i32 to vector<8x1xi32>
      %28 = arith.addi %27, %25 : vector<8x1xi32>
      %c8_i32_13 = arith.constant 8 : i32
      %29 = vector.broadcast %c8_i32_13 : i32 to vector<8x1xi32>
      %30 = arith.cmpi slt, %28, %29 : vector<8x1xi32>
      %c0_14 = arith.constant 0 : index
      %c0_15 = arith.constant 0 : index
      %c0_16 = arith.constant 0 : index
      %31 = vector.load %arg5[%c0_14, %c0_15, %c0_16] : memref<1x8x128xf32, #tpu.memory_space<vmem>>, vector<1x8x128xf32>
      %cst_17 = arith.constant 0.000000e+00 : f32
      %32 = vector.broadcast %cst_17 : f32 to vector<8x1xf32>
      %33 = arith.select %30, %14, %32 : vector<8x1xi1>, vector<8x1xf32>
      %34 = vector.shape_cast %33 : vector<8x1xf32> to vector<1x8x1xf32>
      %cst_18 = arith.constant dense<0.000000e+00> : vector<1xf32>
      %35 = vector.multi_reduction <add>, %34, %cst_18 [1, 2] : vector<1x8x1xf32> to vector<1xf32>
      %36 = vector.shape_cast %35 : vector<1xf32> to vector<1x1x1xf32>
      %37 = vector.extract %36[0, 0, 0] : f32 from vector<1x1x1xf32>
      %38 = vector.broadcast %37 : f32 to vector<1x8x128xf32>
      %39 = arith.addf %31, %38 : vector<1x8x128xf32>
      %c0_19 = arith.constant 0 : index
      %c0_20 = arith.constant 0 : index
      %c0_21 = arith.constant 0 : index
      %40 = vector.load %arg5[%c0_19, %c0_20, %c0_21] : memref<1x8x128xf32, #tpu.memory_space<vmem>>, vector<1x8x128xf32>
      tpu.vector_store %arg5[%c0_19, %c0_20, %c0_21], %39 {strides = array<i32>} : memref<1x8x128xf32, #tpu.memory_space<vmem>>, vector<1x8x128xf32>,
    } else {
    }
    return
  }
  func.func @transform_0(%arg0: i32, %arg1: i32) -> (i32, i32) {
    %c1_i32 = arith.constant 1 : i32
    %0 = arith.muli %arg0, %c1_i32 : i32
    %1 = arith.addi %0, %arg1 : i32
    %c0_i32 = arith.constant 0 : i32
    %2 = arith.minsi %1, %c0_i32 : i32
    %c0_i32_0 = arith.constant 0 : i32
    %c0_i32_1 = arith.constant 0 : i32
    return %2, %c0_i32_0 : i32, i32
  }
  func.func @transform_1(%arg0: i32, %arg1: i32) -> (i32, i32) {
    %c0_i32 = arith.constant 0 : i32
    %c0_i32_0 = arith.constant 0 : i32
    %c0_i32_1 = arith.constant 0 : i32
    return %c0_i32, %c0_i32_0 : i32, i32
  }
  func.func @transform_2(%arg0: i32, %arg1: i32) -> (i32, i32) {
    %c0_i32 = arith.constant 0 : i32
    %c0_i32_0 = arith.constant 0 : i32
    %c0_i32_1 = arith.constant 0 : i32
    return %c0_i32, %c0_i32_0 : i32, i32
  }
  func.func @transform_3(%arg0: i32, %arg1: i32) -> (i32, i32, i32) {
    %c0_i32 = arith.constant 0 : i32
    %c0_i32_0 = arith.constant 0 : i32
    %c0_i32_1 = arith.constant 0 : i32
    return %arg0, %c0_i32, %c0_i32_0 : i32, i32, i32
  }
}

</mosaic_0001>

<bundles_post_ra>
// kernel: tpu_custom_call.1
= control target key start
LH: loop header
LB: loop body
LE: loop exit
PB: predicated region body
PF: predicated region fallthrough
CT: control target
= control target key end

     0   :  { %8 = vsyncpa [#allocation3], 0  ;;  %s395_s0 = inlined_call_operand.hbm [shape: f32[8,128], index: 0, kind: input, shape index: {}]   ;;  %s396_s1 = inlined_call_operand.vmem [shape: f32[1,128], index: 1, kind: input, shape index: {}]   ;;  %s397_s2 = inlined_call_operand.hbm [shape: f32[128,128], index: 2, kind: input, shape index: {}]   ;;  %s398_s3 = inlined_call_operand.hbm [shape: f32[1,8,128], index: 3, kind: output, shape index: {}]  }
   0x1   :  { %9 = vsyncpa [#allocation6], 0 }
   0x2   :  { %10 = vsyncpa [#allocation4], 0  ;;  %s356_s12 = smov [#allocation2]   ;;  %s357_s14 = smov [#allocation5]  }
   0x3   :  { %s22_s13 = sshll.u32 %s356_s12, 4  ;;  %s33_s15 = sshll.u32 %s357_s14, 4  ;;  %s23_s13 = int_to_ptr.vmem [resolvable:$true] %s22_s13  ;;  %s34_s15 = int_to_ptr.vmem [resolvable:$true] %s33_s15 }
   0x4   :  { %s298_s16 = scalar_lea.vmem %s23_s13, 128  ;;  %p303_p1 = scmp.lt.s32.totalorder %s23_s13, %s23_s13 }
   0x5   :  { %p299_p0 = scmp.ne.s32.totalorder %s23_s13, %s298_s16  ;;  %p304_p2 = scmp.lt.s32.totalorder %s298_s16, %s298_s16 }
   0x7   :  { %p305_p3 = por %p304_p2, %p303_p1 }
   0x9   :  { %p306_p4 = pnand %p305_p3, %p299_p0 }
   0xb   :  { %309 = shalt.err (!%p306_p4)
}
   0xc   :  { %25 = dma.hbm_to_vmem [thread:$0]  %s395_s0, 128, %s23_s13, [#allocation3]  }
   0xd   :  { %s318_s19 = scalar_lea.vmem %s34_s15, 2048  ;;  %p323_p6 = scmp.lt.s32.totalorder %s34_s15, %s34_s15 }
   0xe   :  { %p319_p5 = scmp.ne.s32.totalorder %s34_s15, %s318_s19  ;;  %p324_p7 = scmp.lt.s32.totalorder %s318_s19, %s318_s19 }
  0x10   :  { %p325_p8 = por %p324_p7, %p323_p6 }
  0x12   :  { %p326_p9 = pnand %p325_p8, %p319_p5 }
  0x14   :  { %329 = shalt.err (!%p326_p9)
}
  0x15   :  { %s358_s20 = smov 128   ;;  %s359_s21 = smov 8  }
  0x16   :  { %39 = dma.hbm_to_vmem [thread:$0]  %s397_s2, 2048, %s34_s15, [#allocation6], %s358_s20, %s358_s20, %s359_s21  }
  0x17   :  { %350 = dma.done.wait [#allocation3], 128  }
  0x18   :  { %351 = vsyncadd [#allocation3], 4294967168 }
  0x19   :  { %352 = dma.done.wait [#allocation6], 2048  }
  0x1a   :  { %353 = vsyncadd [#allocation6], 4294965248  ;;  %v360_v0 = vmov 0.0   ;;  %vm361_vm0 = vmmov 0   ;;  %v78_v1 = vld [vmem:[#allocation5 + $0x78] sm:$0xff]  ;;  %v77_v2 = vld [vmem:[#allocation5 + $0x70] sm:$0xff] }
  0x1b   :  { %244 = vmatprep.subr.mxu0 %v360_v0  ;;  %276 = vmatprep.mubr.msk.f32.mxu0 %vm361_vm0, %v360_v0  ;;  %v76_v3 = vld [vmem:[#allocation5 + $0x68] sm:$0xff]  ;;  %v75_v4 = vld [vmem:[#allocation5 + $0x60] sm:$0xff]  ;;  %v74_v5 = vld [vmem:[#allocation5 + $0x58] sm:$0xff]  ;;  %vm169_vm2 = vcmask 7168  }
  0x1c   :  { %245 = vmatpush3.msra.mxu0 %v78_v1  ;;  %v73_v6 = vld [vmem:[#allocation5 + $0x50] sm:$0xff]  ;;  %v72_v7 = vld [vmem:[#allocation5 + $0x48] sm:$0xff]  ;;  %v71_v8 = vld [vmem:[#allocation5 + $0x40] sm:$0xff] }
  0x1d   :  { %246 = vmatprep.subr.mxu0 %v360_v0  ;;  %v70_v9 = vld [vmem:[#allocation5 + $0x38] sm:$0xff]  ;;  %v69_v10 = vld [vmem:[#allocation5 + $0x30] sm:$0xff]  ;;  %v68_v11 = vld [vmem:[#allocation5 + $0x28] sm:$0xff] }
  0x1e   :  { %247 = vmatpush3.msra.mxu0 %v77_v2  ;;  %v67_v12 = vld [vmem:[#allocation5 + $0x20] sm:$0xff]  ;;  %v66_v13 = vld [vmem:[#allocation5 + $0x18] sm:$0xff]  ;;  %v65_v14 = vld [vmem:[#allocation5 + $0x10] sm:$0xff] }
  0x1f   :  { %248 = vmatprep.subr.mxu0 %v360_v0  ;;  %v54_v15 = vld [vmem:[#allocation2] sm:$0xff]  ;;  %v64_v17 = vld [vmem:[#allocation5 + $0x8] sm:$0xff]  ;;  %v63_v18 = vld [vmem:[#allocation5] sm:$0xff] }
  0x20   :  { %249 = vmatpush3.msra.mxu0 %v76_v3  ;;  %v226_v16 = vld [vmem:[%s396_s1] ss:$0 sm:$0xff]  ;;  %s362_s1 = smov [#allocation7]  }
  0x21   :  { %250 = vmatprep.subr.mxu0 %v360_v0  ;;  %v62_v19 = vsub.f32 %v54_v15, %v226_v16  ;;  %s214_s24 = sshll.u32 %s362_s1, 4  ;;  %s215_s24 = int_to_ptr.vmem [resolvable:$true] %s214_s24 }
  0x22   :  { %251 = vmatpush3.msra.mxu0 %v75_v4  ;;  %s330_s26 = scalar_lea.vmem %s215_s24, 128  ;;  %p335_p11 = scmp.lt.s32.totalorder %s215_s24, %s215_s24 }
  0x23   :  { %252 = vmatprep.subr.mxu0 %v360_v0  ;;  %p331_p10 = scmp.ne.s32.totalorder %s215_s24, %s330_s26  ;;  %p336_p12 = scmp.lt.s32.totalorder %s330_s26, %s330_s26 }
  0x24   :  { %253 = vmatpush3.msra.mxu0 %v74_v5 }
  0x25   :  { %254 = vmatprep.subr.mxu0 %v360_v0  ;;  %p337_p13 = por %p336_p12, %p335_p11 }
  0x26   :  { %255 = vmatpush3.msra.mxu0 %v73_v6 }
  0x27   :  { %256 = vmatprep.subr.mxu0 %v360_v0  ;;  %p338_p0 = pnand %p337_p13, %p331_p10 }
  0x28   :  { %257 = vmatpush3.msra.mxu0 %v72_v7 }
  0x29   :  { %258 = vmatprep.subr.mxu0 %v360_v0 }
  0x2a   :  { %259 = vmatpush3.msra.mxu0 %v71_v8 }
  0x2b   :  { %260 = vmatprep.subr.mxu0 %v360_v0 }
  0x2c   :  { %261 = vmatpush3.msra.mxu0 %v70_v9 }
  0x2d   :  { %262 = vmatprep.subr.mxu0 %v360_v0 }
  0x2e   :  { %263 = vmatpush3.msra.mxu0 %v69_v10 }
  0x2f   :  { %264 = vmatprep.subr.mxu0 %v360_v0 }
  0x30   :  { %265 = vmatpush3.msra.mxu0 %v68_v11 }
  0x31   :  { %266 = vmatprep.subr.mxu0 %v360_v0 }
  0x32   :  { %267 = vmatpush3.msra.mxu0 %v67_v12 }
  0x33   :  { %268 = vmatprep.subr.mxu0 %v360_v0 }
  0x34   :  { %269 = vmatpush3.msra.mxu0 %v66_v13 }
  0x35   :  { %270 = vmatprep.subr.mxu0 %v360_v0 }
  0x36   :  { %271 = vmatpush3.msra.mxu0 %v65_v14 }
  0x37   :  { %272 = vmatprep.subr.mxu0 %v360_v0 }
  0x38   :  { %273 = vmatpush3.msra.mxu0 %v64_v17 }
  0x39   :  { %274 = vmatprep.subr.mxu0 %v360_v0 }
  0x3a   :  { %275 = vmatpush3.msra.mxu0 %v63_v18 }
  0x3b   :  { %277 = vmatmul.mubr.f32.vlgmr.msra.gmra.mxu0 %v62_v19 }
  0xfb   :  { %v145_v20 = vpop.f32.mrf.mxu0 }
  0xfc   :  { %v149_v21 = vmul.f32 %v145_v20, %v62_v19 }
  0xfd   :  { %v278_v22 = vpop.f32.mrf.mxu0 }
  0xfe   :  { %150 = vadd.xlane.f32.xlu0 %v149_v21 }
 0x187   :  { %v151_v23 = vpop.xlane.xlu0 %150 }
 0x188   :  { %v152_v24 = vmax.f32 %v151_v23, 0.0 }
 0x18a   :  { %288 = vrsqrt.f32 %v152_v24  ;;  %vm155_vm1 = vcmp.eq.f32.partialorder %v152_v24, inf  ;;  %v158_v27 = vand.u32 2147483648, %v152_v24  ;;  %vm157_vm3 = vcmp.eq.f32.partialorder %v152_v24, 0.0 }
 0x197   :  { %v289_v25 = vpop.eup %288 }
 0x198   :  { %v154_v26 = vmul.f32 %v289_v25, %v152_v24 }
 0x19a   :  { %v156_v28 = vsel %vm155_vm1, %v152_v24, %v154_v26 }
 0x19b   :  { %v159_v29 = vsel %vm157_vm3, %v158_v27, %v156_v28 }
 0x19c   :  { %v170_v30 = vsel %vm169_vm2, %v159_v29, 0.0 }
 0x19d   :  { %171 = vadd.xlane.f32.xlu0 %v170_v30 }
 0x226   :  { %v172_v31 = vpop.xlane.xlu0 %171 }
 0x227   :  { %v173_v32 = vrot.slane %v172_v31, 4 }
 0x229   :  { %v174_v33 = vadd.f32 %v173_v32, %v172_v31 }
 0x22b   :  { %v175_v34 = vrot.slane %v174_v33, 2 }
 0x22d   :  { %v176_v35 = vadd.f32 %v175_v34, %v174_v33 }
 0x22f   :  { %v177_v36 = vrot.slane %v176_v35, 1 }
 0x231   :  { %v178_v37 = vadd.f32 %v177_v36, %v176_v35 }
 0x233   :  { %279 = vpush %v178_v37 }
 0x264   :  { %s280_s25 = spop %279 }
 0x265   :  { %v180_v38 = vstv %s280_s25 }
 0x266   :  { %182 = vst [vmem:[#allocation7] sm:$0xff] %v180_v38 }
 0x267   :  { %341 = shalt.err (!%p338_p0)
}
 0x268   :  { %217 = dma.vmem_to_hbm [thread:$0]  %s215_s24, 128, %s398_s3, [#allocation4]  }
 0x269   :  { %354 = dma.done.wait [#allocation4], 128  }
 0x26a   :  { %355 = vsyncadd [#allocation4], 4294967168 }
 0x26b   :  { %221 = vsyncpa [#allocation3], 1 }
 0x26c   :  { %222 = vsyncpa [#allocation6], 1 }
 0x26d   :  { %223 = vsyncpa [#allocation4], 1 }

</bundles_post_ra>
